<compile_context>
chip_gen: v6e
topology: v6e:2x2x1
jax: 0.10.0
libtpu: 0.0.40
codegen_flags: <defaults>
</compile_context>

<pallas_src>
import functools

import jax
import jax.numpy as jnp
from jax.experimental import pallas as pl
from jax.experimental.pallas import tpu as pltpu

LANE = 128


def _round_up(x, m):
    return ((x + m - 1) // m) * m


def mlp_softmax_kernel(x_ref, w1_ref, b1_ref, w2_ref, b2_ref, o_ref):
    x = x_ref[...]                                               # (TB, 64) f32
    # Layer 1: Linear(64 -> 128 padded) + ReLU.
    # Padded hidden units: relu(0 + 0) = 0, so they contribute nothing later.
    h = jnp.dot(x, w1_ref[...], preferred_element_type=jnp.float32) + b1_ref[...]
    h = jnp.maximum(h, 0.0)                                      # (TB, 128)
    # Layer 2: Linear(128 padded -> 10).
    logits = jnp.dot(h, w2_ref[...], preferred_element_type=jnp.float32) + b2_ref[...]
    # Numerically-stable softmax over the feature axis (torch dim=1).
    m = jnp.max(logits, axis=-1, keepdims=True)
    e = jnp.exp(logits - m)
    denom = jnp.sum(e, axis=-1, keepdims=True)
    # Exact normalization: approx reciprocal's error exceeded the 1e-4 tol.
    o_ref[...] = e / denom


def prepare_params(w1, b1, w2, b2):
    """One-time weight prep: transpose to (in, out), pad hidden dim to 128."""
    d_hid, d_in = w1.shape
    d_out = w2.shape[0]
    d_hid_p = _round_up(max(d_hid, LANE), LANE)                  # 128
    w1_p = jnp.zeros((d_in, d_hid_p), jnp.float32).at[:, :d_hid].set(
        w1.T.astype(jnp.float32))
    b1_p = jnp.zeros((1, d_hid_p), jnp.float32).at[:, :d_hid].set(
        b1.reshape(1, -1).astype(jnp.float32))
    w2_p = jnp.zeros((d_hid_p, d_out), jnp.float32).at[:d_hid, :].set(
        w2.T.astype(jnp.float32))
    b2_p = b2.reshape(1, -1).astype(jnp.float32)
    return w1_p, b1_p, w2_p, b2_p


@functools.partial(jax.jit, static_argnames=("block_b",))
def mlp_softmax_forward(x, w1_p, b1_p, w2_p, b2_p, *, block_b=4096):
    """x: (B, 64) f32; prepared params from prepare_params.  Returns (B, 10)."""
    B, d_in = x.shape
    d_hid_p = w1_p.shape[1]
    d_out = w2_p.shape[1]

    # ---- batch tiling: big tiles to amortize per-step overhead, but keep at
    # least 2 grid steps when the batch allows it (feeds both v7x TCs).
    tb = min(block_b, _round_up(B, 8))
    if B >= 16 and pl.cdiv(B, tb) < 2:
        tb = _round_up(pl.cdiv(B, 2), 8)
    grid = (pl.cdiv(B, tb),)                                     # ragged last block masked

    cost = pl.CostEstimate(
        flops=2 * B * (d_in * d_hid_p + d_hid_p * d_out),
        transcendentals=B * d_out,
        bytes_accessed=4 * (B * d_in + B * d_out
                            + d_in * d_hid_p + d_hid_p * d_out
                            + d_hid_p + d_out),
    )

    return pl.pallas_call(
        mlp_softmax_kernel,
        out_shape=jax.ShapeDtypeStruct((B, d_out), jnp.float32),
        grid=grid,
        in_specs=[
            pl.BlockSpec((tb, d_in), lambda i: (i, 0)),          # x tile per step
            pl.BlockSpec((d_in, d_hid_p), lambda i: (0, 0)),     # w1: resident
            pl.BlockSpec((1, d_hid_p), lambda i: (0, 0)),        # b1: resident
            pl.BlockSpec((d_hid_p, d_out), lambda i: (0, 0)),    # w2: resident
            pl.BlockSpec((1, d_out), lambda i: (0, 0)),          # b2: resident
        ],
        out_specs=pl.BlockSpec((tb, d_out), lambda i: (i, 0)),   # (tb, 10): full last dim
        compiler_params=pltpu.CompilerParams(
            dimension_semantics=("parallel",)),                  # 2 TCs on v7x
        cost_estimate=cost,
    )(x, w1_p, b1_p, w2_p, b2_p)


def basic_model_forward(x, w1, b1, w2, b2, *, block_b=4096):
    """Convenience wrapper taking raw PyTorch-layout weights."""
    params = prepare_params(w1, b1, w2, b2)
    return mlp_softmax_forward(x, *params, block_b=block_b)


if __name__ == "__main__":
    key = jax.random.PRNGKey(0)
    k_x, k_w1, k_b1, k_w2, k_b2 = jax.random.split(key, 5)

    B, D_IN, D_HID, D_OUT = 8, 64, 16, 10

    # Deterministic synthetic parameters in PyTorch nn.Linear layout.
    x = jax.random.normal(k_x, (B, D_IN), dtype=jnp.float32)
    w1 = jax.random.normal(k_w1, (D_HID, D_IN), dtype=jnp.float32) * 0.1
    b1 = jax.random.normal(k_b1, (D_HID,), dtype=jnp.float32) * 0.1
    w2 = jax.random.normal(k_w2, (D_OUT, D_HID), dtype=jnp.float32) * 0.1
    b2 = jax.random.normal(k_b2, (D_OUT,), dtype=jnp.float32) * 0.1

    # One-time weight prep (hoisted out of the jitted forward).
    params = prepare_params(w1, b1, w2, b2)

    out = jax.block_until_ready(mlp_softmax_forward(x, *params))

    # Pure-JAX reference check (same semantics as the PyTorch module).
    ref = jax.nn.softmax(jnp.maximum(x @ w1.T + b1, 0.0) @ w2.T + b2, axis=1)
    assert out.shape == (B, D_OUT)
    assert jnp.allclose(out, ref, atol=1e-4, rtol=1e-4)
    assert jnp.allclose(jnp.sum(out, axis=1), 1.0, atol=1e-4)

    # Exercise the batch grid (multiple tiles + ragged, masked final tile).
    B2 = 300
    x2 = jax.random.normal(jax.random.PRNGKey(1), (B2, D_IN), dtype=jnp.float32)
    out2 = jax.block_until_ready(
        mlp_softmax_forward(x2, *params, block_b=128))
    ref2 = jax.nn.softmax(jnp.maximum(x2 @ w1.T + b1, 0.0) @ w2.T + b2, axis=1)
    assert out2.shape == (B2, D_OUT)
    assert jnp.allclose(out2, ref2, atol=1e-4, rtol=1e-4)

    # Also exercise the convenience wrapper (default large tile, >=2 steps path).
    out3 = jax.block_until_ready(basic_model_forward(x2, w1, b1, w2, b2))
    assert jnp.allclose(out3, ref2, atol=1e-4, rtol=1e-4)

    print("KERNEL_OK")
</pallas_src>

<mosaic_0001>
module attributes {stable_mosaic.version = 11 : i64} {
  func.func @mlp_softmax_kernel(%arg0: i32, %arg1: memref<8x64xf32, #tpu.memory_space<vmem>>, %arg2: memref<64x128xf32, #tpu.memory_space<vmem>>, %arg3: memref<1x128xf32, #tpu.memory_space<vmem>>, %arg4: memref<128x10xf32, #tpu.memory_space<vmem>>, %arg5: memref<1x10xf32, #tpu.memory_space<vmem>>, %arg6: memref<8x10xf32, #tpu.memory_space<vmem>>) attributes {dimension_semantics = [#tpu.dimension_semantics<parallel>], iteration_bounds = array<i64: 1>, scalar_prefetch = 0 : i64, scratch_operands = 0 : i64, tpu.core_type = #tpu.core_type<tc>, window_params = [{transform_indices = @transform_0, window_bounds = array<i64: 8, 64>}, {pipeline_mode = #tpu.pipeline_mode<synchronous>, transform_indices = @transform_1, window_bounds = array<i64: 64, 128>}, {pipeline_mode = #tpu.pipeline_mode<synchronous>, transform_indices = @transform_2, window_bounds = array<i64: 1, 128>}, {pipeline_mode = #tpu.pipeline_mode<synchronous>, transform_indices = @transform_3, window_bounds = array<i64: 128, 10>}, {pipeline_mode = #tpu.pipeline_mode<synchronous>, transform_indices = @transform_4, window_bounds = array<i64: 1, 10>}, {transform_indices = @transform_5, window_bounds = array<i64: 8, 10>}]} {
    %c0 = arith.constant 0 : index
    %c0_0 = arith.constant 0 : index
    %0 = vector.load %arg1[%c0, %c0_0] : memref<8x64xf32, #tpu.memory_space<vmem>>, vector<8x64xf32>
    %c0_1 = arith.constant 0 : index
    %c0_2 = arith.constant 0 : index
    %1 = vector.load %arg2[%c0_1, %c0_2] : memref<64x128xf32, #tpu.memory_space<vmem>>, vector<64x128xf32>
    %cst = arith.constant dense<0.000000e+00> : vector<8x128xf32>
    %2 = tpu.matmul %0, %1, %cst {dimension_numbers = #tpu.dot_dimension_numbers<[1], [0], [0], [1], [0, 0, 1, 1], [], []>} : vector<8x64xf32>, vector<64x128xf32>, vector<8x128xf32> -> vector<8x128xf32>
    %c0_3 = arith.constant 0 : index
    %c0_4 = arith.constant 0 : index
    %3 = vector.load %arg3[%c0_3, %c0_4] : memref<1x128xf32, #tpu.memory_space<vmem>>, vector<1x128xf32>
    %4 = vector.broadcast %3 : vector<1x128xf32> to vector<8x128xf32>
    %5 = arith.addf %2, %4 : vector<8x128xf32>
    %cst_5 = arith.constant 0.000000e+00 : f32
    %6 = vector.broadcast %cst_5 : f32 to vector<8x128xf32>
    %7 = arith.maximumf %5, %6 : vector<8x128xf32>
    %c0_6 = arith.constant 0 : index
    %c0_7 = arith.constant 0 : index
    %8 = vector.load %arg4[%c0_6, %c0_7] : memref<128x10xf32, #tpu.memory_space<vmem>>, vector<128x10xf32>
    %cst_8 = arith.constant dense<0.000000e+00> : vector<8x10xf32>
    %9 = tpu.matmul %7, %8, %cst_8 {dimension_numbers = #tpu.dot_dimension_numbers<[1], [0], [0], [1], [0, 0, 1, 1], [], []>} : vector<8x128xf32>, vector<128x10xf32>, vector<8x10xf32> -> vector<8x10xf32>
    %c0_9 = arith.constant 0 : index
    %c0_10 = arith.constant 0 : index
    %10 = vector.load %arg5[%c0_9, %c0_10] : memref<1x10xf32, #tpu.memory_space<vmem>>, vector<1x10xf32>
    %11 = vector.broadcast %10 : vector<1x10xf32> to vector<8x10xf32>
    %12 = arith.addf %9, %11 : vector<8x10xf32>
    %cst_11 = arith.constant dense<0xFF800000> : vector<8xf32>
    %13 = vector.multi_reduction <maximumf>, %12, %cst_11 [1] : vector<8x10xf32> to vector<8xf32>
    %14 = vector.shape_cast %13 : vector<8xf32> to vector<8x1xf32>
    %15 = vector.broadcast %14 : vector<8x1xf32> to vector<8x10xf32>
    %16 = arith.subf %12, %15 : vector<8x10xf32>
    %17 = math.exp %16 : vector<8x10xf32>
    %cst_12 = arith.constant dense<0.000000e+00> : vector<8xf32>
    %18 = vector.multi_reduction <add>, %17, %cst_12 [1] : vector<8x10xf32> to vector<8xf32>
    %19 = vector.shape_cast %18 : vector<8xf32> to vector<8x1xf32>
    %20 = vector.broadcast %19 : vector<8x1xf32> to vector<8x10xf32>
    %21 = arith.divf %17, %20 : vector<8x10xf32>
    %c0_13 = arith.constant 0 : index
    %c0_14 = arith.constant 0 : index
    %22 = vector.load %arg6[%c0_13, %c0_14] : memref<8x10xf32, #tpu.memory_space<vmem>>, vector<8x10xf32>
    tpu.vector_store %arg6[%c0_13, %c0_14], %21 {strides = array<i32>} : memref<8x10xf32, #tpu.memory_space<vmem>>, vector<8x10xf32>,
    return
  }
  func.func @transform_0(%arg0: i32) -> (i32, i32) {
    %c0_i32 = arith.constant 0 : i32
    %c0_i32_0 = arith.constant 0 : i32
    return %arg0, %c0_i32 : i32, i32
  }
  func.func @transform_1(%arg0: i32) -> (i32, i32) {
    %c0_i32 = arith.constant 0 : i32
    %c0_i32_0 = arith.constant 0 : i32
    %c0_i32_1 = arith.constant 0 : i32
    return %c0_i32, %c0_i32_0 : i32, i32
  }
  func.func @transform_2(%arg0: i32) -> (i32, i32) {
    %c0_i32 = arith.constant 0 : i32
    %c0_i32_0 = arith.constant 0 : i32
    %c0_i32_1 = arith.constant 0 : i32
    return %c0_i32, %c0_i32_0 : i32, i32
  }
  func.func @transform_3(%arg0: i32) -> (i32, i32) {
    %c0_i32 = arith.constant 0 : i32
    %c0_i32_0 = arith.constant 0 : i32
    %c0_i32_1 = arith.constant 0 : i32
    return %c0_i32, %c0_i32_0 : i32, i32
  }
  func.func @transform_4(%arg0: i32) -> (i32, i32) {
    %c0_i32 = arith.constant 0 : i32
    %c0_i32_0 = arith.constant 0 : i32
    %c0_i32_1 = arith.constant 0 : i32
    return %c0_i32, %c0_i32_0 : i32, i32
  }
  func.func @transform_5(%arg0: i32) -> (i32, i32) {
    %c0_i32 = arith.constant 0 : i32
    %c0_i32_0 = arith.constant 0 : i32
    return %arg0, %c0_i32 : i32, i32
  }
}

</mosaic_0001>

<bundles_post_ra>
// kernel: mlp_softmax_forward.1
= control target key start
LH: loop header
LB: loop body
LE: loop exit
PB: predicated region body
PF: predicated region fallthrough
CT: control target
= control target key end

     0   :  { %v344_v1 = vmov 0.0   ;;  %vm345_vm0 = vmmov 0   ;;  %s490_s0 = inlined_call_operand.vmem [shape: f32[8,64], index: 0, kind: input, shape index: {}]   ;;  %s491_s1 = inlined_call_operand.vmem [shape: f32[64,128], index: 1, kind: input, shape index: {}]   ;;  %s492_s2 = inlined_call_operand.vmem [shape: f32[1,128], index: 2, kind: input, shape index: {}]   ;;  %s493_s3 = inlined_call_operand.vmem [shape: f32[128,10], index: 3, kind: input, shape index: {}]   ;;  %s494_s4 = inlined_call_operand.vmem [shape: f32[1,10], index: 4, kind: input, shape index: {}]   ;;  %s495_s5 = inlined_call_operand.hbm [shape: f32[8,10], index: 5, kind: output, shape index: {}]  }
   0x1   :  { %v29_v0 = vld [vmem:[%s491_s1 + $0x38] sm:$0xff]  ;;  %261 = vmatprep.subr.mxu0 %v344_v1  ;;  %v28_v2 = vld [vmem:[%s491_s1 + $0x30] sm:$0xff]  ;;  %277 = vmatprep.mubr.msk.f32.mxu0 %vm345_vm0, %v344_v1  ;;  %v27_v3 = vld [vmem:[%s491_s1 + $0x28] sm:$0xff] }
   0x2   :  { %262 = vmatpush3.msra.mxu0 %v29_v0  ;;  %280 = vmatprep.subr.mxu1 %v344_v1  ;;  %v127_v4 = vld [vmem:[%s493_s3 + $0x78] sm:$0xff]  ;;  %v126_v5 = vld [vmem:[%s493_s3 + $0x70] sm:$0xff]  ;;  %v26_v6 = vld [vmem:[%s491_s1 + $0x20] sm:$0xff] }
   0x3   :  { %263 = vmatprep.subr.mxu0 %v344_v1  ;;  %312 = vmatprep.mubr.msk.f32.mxu1 %vm345_vm0, %v344_v1  ;;  %v125_v7 = vld [vmem:[%s493_s3 + $0x68] sm:$0xff]  ;;  %v25_v8 = vld [vmem:[%s491_s1 + $0x18] sm:$0xff]  ;;  %v124_v9 = vld [vmem:[%s493_s3 + $0x60] sm:$0xff] }
   0x4   :  { %264 = vmatpush3.msra.mxu0 %v28_v2  ;;  %281 = vmatpush3.msra.mxu1 %v127_v4 }
   0x5   :  { %265 = vmatprep.subr.mxu0 %v344_v1  ;;  %282 = vmatprep.subr.mxu1 %v344_v1 }
   0x6   :  { %266 = vmatpush3.msra.mxu0 %v27_v3  ;;  %283 = vmatpush3.msra.mxu1 %v126_v5 }
   0x7   :  { %267 = vmatprep.subr.mxu0 %v344_v1  ;;  %284 = vmatprep.subr.mxu1 %v344_v1 }
   0x8   :  { %10 = vsyncpa [#allocation3], 0  ;;  %268 = vmatpush3.msra.mxu0 %v26_v6  ;;  %285 = vmatpush3.msra.mxu1 %v125_v7  ;;  %v24_v10 = vld [vmem:[%s491_s1 + $0x10] sm:$0xff]  ;;  %v123_v11 = vld [vmem:[%s493_s3 + $0x58] sm:$0xff]  ;;  %vm37_vm1 = vcmask 523264   ;;  %vm205_vm2 = vcmask 80896  }
   0x9   :  { %269 = vmatprep.subr.mxu0 %v344_v1  ;;  %286 = vmatprep.subr.mxu1 %v344_v1  ;;  %v23_v12 = vld [vmem:[%s491_s1 + $0x8] sm:$0xff]  ;;  %v122_v13 = vld [vmem:[%s493_s3 + $0x50] sm:$0xff]  ;;  %v22_v14 = vld [vmem:[%s491_s1] sm:$0xff] }
   0xa   :  { %270 = vmatpush3.msra.mxu0 %v25_v8  ;;  %287 = vmatpush3.msra.mxu1 %v124_v9  ;;  %v121_v15 = vld [vmem:[%s493_s3 + $0x48] sm:$0xff]  ;;  %v21_v16 = vld [vmem:[%s490_s0] sm:$0xff]  ;;  %v119_v18 = vld [vmem:[%s493_s3 + $0x38] sm:$0xff] }
   0xb   :  { %271 = vmatprep.subr.mxu0 %v344_v1  ;;  %288 = vmatprep.subr.mxu1 %v344_v1  ;;  %v120_v17 = vld [vmem:[%s493_s3 + $0x40] sm:$0xff]  ;;  %v118_v19 = vld [vmem:[%s493_s3 + $0x30] sm:$0xff]  ;;  %v117_v20 = vld [vmem:[%s493_s3 + $0x28] sm:$0xff] }
   0xc   :  { %272 = vmatpush3.msra.mxu0 %v24_v10  ;;  %289 = vmatpush3.msra.mxu1 %v123_v11  ;;  %v116_v21 = vld [vmem:[%s493_s3 + $0x20] sm:$0xff]  ;;  %v115_v22 = vld [vmem:[%s493_s3 + $0x18] sm:$0xff]  ;;  %v114_v23 = vld [vmem:[%s493_s3 + $0x10] sm:$0xff] }
   0xd   :  { %273 = vmatprep.subr.mxu0 %v344_v1  ;;  %290 = vmatprep.subr.mxu1 %v344_v1  ;;  %v113_v24 = vld [vmem:[%s493_s3 + $0x8] sm:$0xff]  ;;  %v112_v25 = vld [vmem:[%s493_s3] sm:$0xff] }
   0xe   :  { %274 = vmatpush3.msra.mxu0 %v23_v12  ;;  %291 = vmatpush3.msra.mxu1 %v122_v13  ;;  %v232_v26 = vld [vmem:[%s492_s2] ss:$0 sm:$0xff]  ;;  %s346_s2 = smov [#allocation2]  }
   0xf   :  { %275 = vmatprep.subr.mxu0 %v344_v1  ;;  %292 = vmatprep.subr.mxu1 %v344_v1  ;;  %v234_v31 = vld [vmem:[%s494_s4] ss:$0 sm:$0xff]  ;;  %s224_s3 = sshll.u32 %s346_s2, 4  ;;  %s225_s3 = int_to_ptr.vmem [resolvable:$true] %s224_s3 }
  0x10   :  { %276 = vmatpush3.msra.mxu0 %v22_v14  ;;  %293 = vmatpush3.msra.mxu1 %v121_v15  ;;  %s322_s4 = scalar_lea.vmem %s225_s3, 128  ;;  %p327_p1 = scmp.lt.s32.totalorder %s225_s3, %s225_s3 }
  0x11   :  { %278 = vmatmul.mubr.msk.f32.vlgmr.msra.gmra.mxu0 %vm37_vm1, %v21_v16  ;;  %294 = vmatprep.subr.mxu1 %v344_v1  ;;  %p323_p0 = scmp.ne.s32.totalorder %s225_s3, %s322_s4  ;;  %p328_p2 = scmp.lt.s32.totalorder %s322_s4, %s322_s4 }
  0x12   :  { %295 = vmatpush3.msra.mxu1 %v120_v17 }
  0x13   :  { %296 = vmatprep.subr.mxu1 %v344_v1  ;;  %p329_p3 = por %p328_p2, %p327_p1 }
  0x14   :  { %297 = vmatpush3.msra.mxu1 %v119_v18 }
  0x15   :  { %298 = vmatprep.subr.mxu1 %v344_v1  ;;  %p330_p4 = pnand %p329_p3, %p323_p0 }
  0x16   :  { %299 = vmatpush3.msra.mxu1 %v118_v19 }
  0x17   :  { %300 = vmatprep.subr.mxu1 %v344_v1 }
  0x18   :  { %301 = vmatpush3.msra.mxu1 %v117_v20 }
  0x19   :  { %302 = vmatprep.subr.mxu1 %v344_v1 }
  0x1a   :  { %303 = vmatpush3.msra.mxu1 %v116_v21 }
  0x1b   :  { %304 = vmatprep.subr.mxu1 %v344_v1 }
  0x1c   :  { %305 = vmatpush3.msra.mxu1 %v115_v22 }
  0x1d   :  { %306 = vmatprep.subr.mxu1 %v344_v1 }
  0x1e   :  { %307 = vmatpush3.msra.mxu1 %v114_v23 }
  0x1f   :  { %308 = vmatprep.subr.mxu1 %v344_v1 }
  0x20   :  { %309 = vmatpush3.msra.mxu1 %v113_v24 }
  0x21   :  { %310 = vmatprep.subr.mxu1 %v344_v1 }
  0x22   :  { %311 = vmatpush3.msra.mxu1 %v112_v25 }
  0xd1   :  { %v107_v27 = vpop.f32.mrf.mxu0 }
  0xd2   :  { %v108_v28 = vadd.f32 %v232_v26, %v107_v27 }
  0xd3   :  { %v279_v29 = vpop.f32.mrf.mxu0 }
  0xd4   :  { %v111_v30 = vmax.f32 %v108_v28, 0.0 }
  0xd6   :  { %313 = vmatmul.mubr.f32.vlgmr.msra.gmra.mxu1 %v111_v30 }
 0x196   :  { %v201_v32 = vpop.f32.mrf.mxu1 }
 0x197   :  { %v202_v33 = vadd.f32 %v234_v31, %v201_v32 }
 0x198   :  { %v314_v34 = vpop.f32.mrf.mxu1 }
 0x199   :  { %v206_v35 = vsel %vm205_vm2, %v202_v33, -inf }
 0x19a   :  { %207 = vmax.xlane.f32.xlu0 %v206_v35 }
 0x223   :  { %v208_v36 = vpop.xlane.xlu0 %207 }
 0x224   :  { %v209_v37 = vsub.f32 %v202_v33, %v208_v36 }
 0x226   :  { %v210_v38 = vmul.f32 1.442695, %v209_v37 }
 0x228   :  { %318 = vpow2.f32 %v210_v38 }
 0x235   :  { %v319_v39 = vpop.eup %318 }
 0x236   :  { %v212_v40 = vsel %vm205_vm2, %v319_v39, 0.0 }
 0x237   :  { %213 = vadd.xlane.f32.xlu0 %v212_v40 }
 0x2c0   :  { %v214_v41 = vpop.xlane.xlu0 %213 }
 0x2c1   :  { %320 = vrcp.f32 %v214_v41 }
 0x2ce   :  { %v321_v42 = vpop.eup %320 }
 0x2cf   :  { %v216_v43 = vmul.f32 %v321_v42, %v319_v39 }
 0x2d1   :  { %217 = vst.msk [vmem:[#allocation2] sm:$0xff] %vm205_vm2, %v216_v43 }
 0x2d2   :  { %333 = shalt.err (!%p330_p4)
}
 0x2d3   :  { %227 = dma.vmem_to_hbm [thread:$0]  %s225_s3, 128, %s495_s5, [#allocation3]  }
 0x2d4   :  { %342 = dma.done.wait [#allocation3], 128  }
 0x2d5   :  { %343 = vsyncadd [#allocation3], 4294967168 }
 0x2d6   :  { %231 = vsyncpa [#allocation3], 1 }

</bundles_post_ra>
